<compile_context>
chip_gen: v6e
topology: v6e:2x2x1
jax: 0.10.0
libtpu: 0.0.40
codegen_flags: <defaults>
</compile_context>

<pallas_src>
import jax
import jax.numpy as jnp
from jax.experimental import pallas as pl
from jax.experimental.pallas import tpu as pltpu

FEAT = 256
MAX_TM = 2048            # rows per grid step (per-core tile); see VMEM budget above
VMEM_LIMIT_BYTES = 48 * 1024 * 1024


def _round_up(x, m):
    return ((x + m - 1) // m) * m


def resblock_kernel(x_ref, w_ref, b_ref, o_ref):
    # bf16 input tile straight to the MXU; one f32 copy for the residual chain.
    x_bf = x_ref[...]
    x_f32 = x_bf.astype(jnp.float32)

    # Concatenated bf16 weights: [:, 0:256]=lz, [:, 256:512]=l1, [:, 512:768]=l2.
    wz = w_ref[:, 0 * FEAT:1 * FEAT]
    w1 = w_ref[:, 1 * FEAT:2 * FEAT]
    w2 = w_ref[:, 2 * FEAT:3 * FEAT]
    bz = b_ref[:, 0 * FEAT:1 * FEAT]
    b1 = b_ref[:, 1 * FEAT:2 * FEAT]
    b2 = b_ref[:, 2 * FEAT:3 * FEAT]

    # z = relu(lz(x))          -- bf16 operands, f32 accumulation + f32 epilogue
    z = jnp.dot(x_bf, wz, preferred_element_type=jnp.float32) + bz
    z = jnp.maximum(z, 0.0)

    # res = x + z              -- f32
    res = x_f32 + z

    # h = relu(l1(res))
    h = jnp.dot(res.astype(jnp.bfloat16), w1, preferred_element_type=jnp.float32) + b1
    h = jnp.maximum(h, 0.0)

    # out = relu(l2(h)) + res
    out = jnp.dot(h.astype(jnp.bfloat16), w2, preferred_element_type=jnp.float32) + b2
    out = jnp.maximum(out, 0.0) + res

    o_ref[...] = out.astype(o_ref.dtype)


def _choose_tiling(n):
    """Pick (tm, grid_steps, n_pad): even split, >=2 even steps for megacore, 16-aligned."""
    grid_steps = pl.cdiv(n, MAX_TM)
    if n > 64:
        # Guarantee at least two (and an even number of) steps so v7x's second
        # TensorCore gets work and the per-core load stays balanced.
        grid_steps = max(grid_steps, 2)
        grid_steps += grid_steps % 2
    tm = max(16, _round_up(pl.cdiv(n, grid_steps), 16))  # 16: bf16 sublane packing
    n_pad = grid_steps * tm
    return tm, grid_steps, n_pad


def resblock_forward(x, params):
    """x: [N, 256] (any float dtype). Returns bf16 [N, 256].

    params: {'w_cat': (256, 768) bf16, 'b_cat': (1, 768) f32}.
    """
    n, f = x.shape
    assert f == FEAT

    tm, grid_steps, n_pad = _choose_tiling(n)

    # bf16 I/O at the kernel boundary (halves HBM traffic; kernel epilogue stays f32).
    x_bf = x.astype(jnp.bfloat16)
    if n_pad != n:
        x_bf = jnp.pad(x_bf, ((0, n_pad - n), (0, 0)))

    flops = 6 * n_pad * FEAT * FEAT                 # 3 matmuls, 2 flops per MAC
    bytes_accessed = (2 * n_pad * FEAT * 2          # bf16 x in + bf16 out
                      + FEAT * 3 * FEAT * 2         # bf16 fused weights (resident)
                      + 3 * FEAT * 4)               # f32 fused biases

    out = pl.pallas_call(
        resblock_kernel,
        out_shape=jax.ShapeDtypeStruct((n_pad, FEAT), jnp.bfloat16),
        grid_spec=pl.GridSpec(
            grid=(grid_steps,),
            in_specs=[
                # x tile: streamed, double-buffered by default.
                pl.BlockSpec((tm, FEAT), lambda i: (i, 0)),
                # Fused weights / biases: constant index_map -> resident, single-buffered.
                pl.BlockSpec((FEAT, 3 * FEAT), lambda i: (0, 0),
                             pipeline_mode=pl.Buffered(1)),
                pl.BlockSpec((1, 3 * FEAT), lambda i: (0, 0),
                             pipeline_mode=pl.Buffered(1)),
            ],
            out_specs=pl.BlockSpec((tm, FEAT), lambda i: (i, 0)),
        ),
        compiler_params=pltpu.CompilerParams(
            dimension_semantics=("parallel",),
            vmem_limit_bytes=VMEM_LIMIT_BYTES,
        ),
        cost_estimate=pl.CostEstimate(
            flops=flops, transcendentals=0, bytes_accessed=bytes_accessed),
    )(x_bf, params["w_cat"], params["b_cat"])

    return out if n_pad == n else out[:n]


def init_params(key):
    """Deterministic init matching nn.Linear default (uniform(-1/sqrt(in), 1/sqrt(in)))."""
    bound = 1.0 / jnp.sqrt(jnp.float32(FEAT))
    keys = jax.random.split(key, 6)

    def lin(kw, kb):
        w = jax.random.uniform(kw, (FEAT, FEAT), jnp.float32, -bound, bound)  # (out, in)
        b = jax.random.uniform(kb, (FEAT,), jnp.float32, -bound, bound)
        return w, b

    wz, bz = lin(keys[0], keys[1])
    w1, b1 = lin(keys[2], keys[3])
    w2, b2 = lin(keys[4], keys[5])

    # Pre-transpose to (in, out), cast weights to bf16, concatenate so the kernel
    # receives a single resident (256, 768) weight tile and a (1, 768) bias tile.
    w_cat = jnp.concatenate([wz.T, w1.T, w2.T], axis=1).astype(jnp.bfloat16)
    b_cat = jnp.concatenate([bz, b1, b2], axis=0).reshape(1, 3 * FEAT)

    # Keep f32 transposed copies around for the reference implementation.
    return {
        "w_cat": w_cat, "b_cat": b_cat,
        "wz_t": wz.T, "bz": bz.reshape(1, FEAT),
        "w1_t": w1.T, "b1": b1.reshape(1, FEAT),
        "w2_t": w2.T, "b2": b2.reshape(1, FEAT),
    }


def resblock_reference(x, params):
    """Pure-f32 reference matching the PyTorch module semantics."""
    z = jax.nn.relu(x @ params["wz_t"] + params["bz"])
    res = x + z
    h = jax.nn.relu(res @ params["w1_t"] + params["b1"])
    return jax.nn.relu(h @ params["w2_t"] + params["b2"]) + res


if __name__ == "__main__":
    key = jax.random.PRNGKey(0)
    kx, kp = jax.random.split(key)

    n = 128  # small batch of 256-d feature vectors (grid=(2,), tm=64)
    x = jax.random.normal(kx, (n, FEAT), jnp.float32)
    params = init_params(kp)

    out = resblock_forward(x, params)
    out = jax.block_until_ready(out)

    ref = resblock_reference(x, params)
    assert out.shape == (n, FEAT)
    # bf16 I/O + bf16 matmul operands (f32 accumulation) -> loosened tolerance vs f32 ref.
    assert jnp.allclose(out.astype(jnp.float32), ref, atol=1e-1, rtol=1e-1), (
        float(jnp.max(jnp.abs(out.astype(jnp.float32) - ref))))

    print("KERNEL_OK")
</pallas_src>

<mosaic_0001>
module attributes {stable_mosaic.version = 11 : i64} {
  func.func @resblock_kernel(%arg0: i32, %arg1: memref<64x256xbf16, #tpu.memory_space<vmem>>, %arg2: memref<256x768xbf16, #tpu.memory_space<vmem>>, %arg3: memref<1x768xf32, #tpu.memory_space<vmem>>, %arg4: memref<64x256xbf16, #tpu.memory_space<vmem>>) attributes {dimension_semantics = [#tpu.dimension_semantics<parallel>], iteration_bounds = array<i64: 2>, scalar_prefetch = 0 : i64, scratch_operands = 0 : i64, tpu.core_type = #tpu.core_type<tc>, window_params = [{transform_indices = @transform_0, window_bounds = array<i64: 64, 256>}, {pipeline_mode = #tpu.pipeline_mode<synchronous>, transform_indices = @transform_1, window_bounds = array<i64: 256, 768>}, {pipeline_mode = #tpu.pipeline_mode<synchronous>, transform_indices = @transform_2, window_bounds = array<i64: 1, 768>}, {transform_indices = @transform_3, window_bounds = array<i64: 64, 256>}]} {
    %c0 = arith.constant 0 : index
    %c0_0 = arith.constant 0 : index
    %0 = vector.load %arg1[%c0, %c0_0] : memref<64x256xbf16, #tpu.memory_space<vmem>>, vector<64x256xbf16>
    %1 = arith.extf %0 : vector<64x256xbf16> to vector<64x256xf32>
    %c0_1 = arith.constant 0 : index
    %c0_2 = arith.constant 0 : index
    %2 = vector.load %arg2[%c0_1, %c0_2] : memref<256x768xbf16, #tpu.memory_space<vmem>>, vector<256x256xbf16>
    %c0_3 = arith.constant 0 : index
    %c256 = arith.constant 256 : index
    %3 = vector.load %arg2[%c0_3, %c256] : memref<256x768xbf16, #tpu.memory_space<vmem>>, vector<256x256xbf16>
    %c0_4 = arith.constant 0 : index
    %c512 = arith.constant 512 : index
    %4 = vector.load %arg2[%c0_4, %c512] : memref<256x768xbf16, #tpu.memory_space<vmem>>, vector<256x256xbf16>
    %c0_5 = arith.constant 0 : index
    %c0_6 = arith.constant 0 : index
    %5 = vector.load %arg3[%c0_5, %c0_6] : memref<1x768xf32, #tpu.memory_space<vmem>>, vector<1x256xf32>
    %c0_7 = arith.constant 0 : index
    %c256_8 = arith.constant 256 : index
    %6 = vector.load %arg3[%c0_7, %c256_8] : memref<1x768xf32, #tpu.memory_space<vmem>>, vector<1x256xf32>
    %c0_9 = arith.constant 0 : index
    %c512_10 = arith.constant 512 : index
    %7 = vector.load %arg3[%c0_9, %c512_10] : memref<1x768xf32, #tpu.memory_space<vmem>>, vector<1x256xf32>
    %cst = arith.constant dense<0.000000e+00> : vector<64x256xf32>
    %8 = tpu.matmul %0, %2, %cst {dimension_numbers = #tpu.dot_dimension_numbers<[1], [0], [0], [1], [0, 0, 1, 1], [], []>} : vector<64x256xbf16>, vector<256x256xbf16>, vector<64x256xf32> -> vector<64x256xf32>
    %9 = vector.broadcast %5 : vector<1x256xf32> to vector<64x256xf32>
    %10 = arith.addf %8, %9 : vector<64x256xf32>
    %cst_11 = arith.constant 0.000000e+00 : f32
    %11 = vector.broadcast %cst_11 : f32 to vector<64x256xf32>
    %12 = arith.maximumf %10, %11 : vector<64x256xf32>
    %13 = arith.addf %1, %12 : vector<64x256xf32>
    %14 = arith.truncf %13 : vector<64x256xf32> to vector<64x256xbf16>
    %cst_12 = arith.constant dense<0.000000e+00> : vector<64x256xf32>
    %15 = tpu.matmul %14, %3, %cst_12 {dimension_numbers = #tpu.dot_dimension_numbers<[1], [0], [0], [1], [0, 0, 1, 1], [], []>} : vector<64x256xbf16>, vector<256x256xbf16>, vector<64x256xf32> -> vector<64x256xf32>
    %16 = vector.broadcast %6 : vector<1x256xf32> to vector<64x256xf32>
    %17 = arith.addf %15, %16 : vector<64x256xf32>
    %cst_13 = arith.constant 0.000000e+00 : f32
    %18 = vector.broadcast %cst_13 : f32 to vector<64x256xf32>
    %19 = arith.maximumf %17, %18 : vector<64x256xf32>
    %20 = arith.truncf %19 : vector<64x256xf32> to vector<64x256xbf16>
    %cst_14 = arith.constant dense<0.000000e+00> : vector<64x256xf32>
    %21 = tpu.matmul %20, %4, %cst_14 {dimension_numbers = #tpu.dot_dimension_numbers<[1], [0], [0], [1], [0, 0, 1, 1], [], []>} : vector<64x256xbf16>, vector<256x256xbf16>, vector<64x256xf32> -> vector<64x256xf32>
    %22 = vector.broadcast %7 : vector<1x256xf32> to vector<64x256xf32>
    %23 = arith.addf %21, %22 : vector<64x256xf32>
    %cst_15 = arith.constant 0.000000e+00 : f32
    %24 = vector.broadcast %cst_15 : f32 to vector<64x256xf32>
    %25 = arith.maximumf %23, %24 : vector<64x256xf32>
    %26 = arith.addf %25, %13 : vector<64x256xf32>
    %27 = arith.truncf %26 : vector<64x256xf32> to vector<64x256xbf16>
    %c0_16 = arith.constant 0 : index
    %c0_17 = arith.constant 0 : index
    %28 = vector.load %arg4[%c0_16, %c0_17] : memref<64x256xbf16, #tpu.memory_space<vmem>>, vector<64x256xbf16>
    tpu.vector_store %arg4[%c0_16, %c0_17], %27 {strides = array<i32>} : memref<64x256xbf16, #tpu.memory_space<vmem>>, vector<64x256xbf16>,
    return
  }
  func.func @transform_0(%arg0: i32) -> (i32, i32) {
    %c0_i32 = arith.constant 0 : i32
    %c0_i32_0 = arith.constant 0 : i32
    return %arg0, %c0_i32 : i32, i32
  }
  func.func @transform_1(%arg0: i32) -> (i32, i32) {
    %c0_i32 = arith.constant 0 : i32
    %c0_i32_0 = arith.constant 0 : i32
    %c0_i32_1 = arith.constant 0 : i32
    return %c0_i32, %c0_i32_0 : i32, i32
  }
  func.func @transform_2(%arg0: i32) -> (i32, i32) {
    %c0_i32 = arith.constant 0 : i32
    %c0_i32_0 = arith.constant 0 : i32
    %c0_i32_1 = arith.constant 0 : i32
    return %c0_i32, %c0_i32_0 : i32, i32
  }
  func.func @transform_3(%arg0: i32) -> (i32, i32) {
    %c0_i32 = arith.constant 0 : i32
    %c0_i32_0 = arith.constant 0 : i32
    return %arg0, %c0_i32 : i32, i32
  }
}

</mosaic_0001>

<bundles_post_ra>
// kernel: tpu_custom_call.1
= control target key start
LH: loop header
LB: loop body
LE: loop exit
PB: predicated region body
PF: predicated region fallthrough
CT: control target
= control target key end

     0   :  { %8 = vsyncpa [#allocation3], 0  ;;  %s2429_s0 = inlined_call_operand.hbm [shape: bf16[128,256], index: 0, kind: input, shape index: {}]   ;;  %s2430_s1 = inlined_call_operand.hbm [shape: bf16[256,768], index: 1, kind: input, shape index: {}]   ;;  %s2431_s2 = inlined_call_operand.hbm [shape: f32[1,768], index: 2, kind: input, shape index: {}]   ;;  %s2432_s3 = inlined_call_operand.hbm [shape: bf16[128,256], index: 3, kind: output, shape index: {}]  }
   0x1   :  { %10 = vsyncpa [#allocation3 + $0x1], 0 }
   0x2   :  { %11 = vsyncpa [#allocation6], 0 }
   0x3   :  { %12 = vsyncpa [#allocation4], 0 }
   0x4   :  { %14 = vsyncpa [#allocation4 + $0x1], 0  ;;  %s1954_s12 = smov 0   ;;  %s1956_s13 = smov 0  }
   0x5   :  { %s1958_s14 = smov 0   ;;  %s1960_s15 = smov 0  }
   0x6 LB: > { %s1975_s16 = sadd.s32 4294967295, %s1922_s15   ;;  %s1373_s17 = sadd.s32 4294967294, %s1922_s15   ;;  %s1922_s15 = sphi %s1960_s15, %s2454_s15   ;;  %s1918_s14 = sphi %s1958_s14, %s2453_s14   ;;  %s1914_s13 = sphi %s1956_s13, %s2452_s13   ;;  %s1910_s12 = sphi %s1954_s12, %s2451_s12  }
   0x7   : > { %p40_p0 = scmp.ne.s32.totalorder %s1914_s13, %s1910_s12  ;;  %p2433_p1 = scmp.eq.s32.totalorder %s1975_s16, 0 }
   0x8   : > { %p112_p3 = scmp.eq.s32.totalorder %s1373_s17, 1  ;;  %p1374_p5 = scmp.ge.s32.totalorder %s1922_s15, 1 }
   0x9   : > { %p1984_p4 = por %p2433_p1, %p40_p0  ;;  %p119_p7 = scmp.lt.s32.totalorder %s1922_s15, 3 }
   0xa   : > { %p1989_p6 = por %p112_p3, %p40_p0  ;;  %s1924_s21 = smov [#allocation5]  }
   0xb   : > { %s2437_s18 = scalar_select %p1984_p4, 1, 0 }
   0xc   : > { %s2438_s19 = scalar_select %p1989_p6, 1, 0 }
   0xd   : > { %p1994_p8 = pnand %p1374_p5, %p119_p7  ;;  %s131_s22 = sshll.u32 %s1924_s21, 4  ;;  %s132_s22 = int_to_ptr.vmem [resolvable:$true] %s131_s22 }
   0xe   : > { %s1925_s24 = smov [#allocation7]   ;;  %s1785_s26 = scalar_lea.vmem %s132_s22, 12288 }
   0xf   : > { %s2439_s20 = scalar_select %p1994_p8, 1, 0 }
  0x10   : > { %p1561_p9 = pneg %p1994_p8  ;;  %s145_s25 = sshll.u32 %s1925_s24, 4  ;;  %s146_s25 = int_to_ptr.vmem [resolvable:$true] %s145_s25 }
  0x11   : > { %p1786_p13 = scmp.ne.s32.totalorder %s132_s22, %s1785_s26  ;;  %p1793_p5 = scmp.lt.s32.totalorder %s132_s22, %s132_s22 }
  0x12   : > { %p2003_p11 = pnand %p1561_p9, %p2433_p1  ;;  %p1794_p7 = scmp.lt.s32.totalorder %s1785_s26, %s1785_s26 }
  0x14   : > { %p1776_p12 = pneg %p2003_p11  ;;  %p1795_p10 = por %p1794_p7, %p1793_p5 }
  0x16   : > { %p1788_p0 = pnand %p1786_p13, %p1776_p12 }
  0x18   : > { %p1789_p3 = pneg %p1788_p0 }
  0x1a   : > { %p1796_p9 = pnand %p1795_p10, %p1789_p3 }
  0x1c   : > { %1799 = shalt.err (!%p1796_p9)
}
  0x1d   : > { %s1926_s27 = smov 384   ;;  %s1927_s28 = smov 24  }
  0x1e   : > { %1564 = dma.hbm_to_vmem [thread:$0]  (!%p2003_p11), %s2430_s1, 12288, %s132_s22, [#allocation6], %s1926_s27, %s1926_s27, %s1927_s28  }
  0x1f   : > { %s1811_s4 = scalar_lea.vmem %s146_s25, 96  ;;  %p1819_p2 = scmp.lt.s32.totalorder %s146_s25, %s146_s25 }
  0x20   : > { %p1812_p1 = scmp.ne.s32.totalorder %s146_s25, %s1811_s4  ;;  %p1820_p6 = scmp.lt.s32.totalorder %s1811_s4, %s1811_s4 }
  0x22   : > { %p1814_p13 = pnand %p1812_p1, %p1776_p12  ;;  %p1821_p5 = por %p1820_p6, %p1819_p2 }
  0x24   : > { %p1815_p0 = pneg %p1814_p13 }
  0x26   : > { %p1822_p10 = pnand %p1821_p5, %p1815_p0 }
  0x28   : > { %1825 = shalt.err (!%p1822_p10)
}
  0x29   : > { %1567 = dma.hbm_to_vmem [thread:$0]  (!%p2003_p11), %s2431_s2, 96, %s146_s25, [#allocation6]  }
  0x2a   : > { %s2026_s7 = sadd.s32 1, %s1922_s15   ;;  %s27_s8 = sadd.s32 1, %s1918_s14 }
  0x2b   : > { %s24_s9 = ssub.s32 %s1922_s15, %s2026_s7  ;;  %p34_p1 = scmp.ne.s32.totalorder %s1918_s14, %s1914_s13 }
  0x2c   : > { %p25_p2 = scmp.eq.s32.totalorder %s24_s9, 0  ;;  %p35_p6 = scmp.eq.s32.totalorder %s1922_s15, 0 }
  0x2d   : > { %p2441_p12 = scmp.eq.s32.totalorder %s1975_s16, 1  ;;  %p1578_p7 = scmp.lt.s32.totalorder %s1922_s15, 2 }
  0x2e   : > { %s2042_s11 = scalar_select %p25_p2, %s1918_s14, %s27_s8  }
  0x2f   : > { %p2036_p3 = por %p2441_p12, %p34_p1  ;;  %p36_p9 = por %p35_p6, %p34_p1 }
  0x30   : > { %s156_s17 = sand.u32 1, %s1918_s14   ;;  %s1506_s22 = sshll.u32 %s1922_s15, 10 }
  0x31   : > { %s2442_s10 = scalar_select %p2036_p3, 1, 0 }
  0x32   : > { %s1378_s21 = sshll.u32 %s156_s17, 6  ;;  %s2049_s25 = scalar_lea.hbm %s2429_s0, %s1506_s22 }
  0x33   : > { %s160_s26 = scalar_lea.vmem [#allocation2], %s1378_s21  ;;  %p2053_p11 = pnand %p1578_p7, %p36_p9 }
  0x34   : > { %s168_s27 = sshll.u32 %s160_s26, 4  ;;  %s2057_s29 = scalar_lea.sflag [#allocation3], %s156_s17  ;;  %s2051_s27 = int_to_ptr.vmem [resolvable:$true] %s168_s27 }
  0x35   : > { %s1826_s30 = scalar_lea.hbm %s2049_s25, 1024  ;;  %p1828_p0 = pneg %p2053_p11 }
  0x36   : > { %p1827_p13 = scmp.ne.s32.totalorder %s2049_s25, %s1826_s30  ;;  %s1831_s6 = scalar_lea.hbm %s2429_s0, 2048 }
  0x37   : > { %p1832_p1 = scmp.lt.s32.totalorder %s2049_s25, %s2429_s0  ;;  %p1833_p2 = scmp.lt.s32.totalorder %s1831_s6, %s1826_s30 }
  0x38   : > { %p1829_p5 = pnand %p1828_p0, %p1827_p13 }
  0x39   : > { %p1834_p6 = por %p1833_p2, %p1832_p1 }
  0x3a   : > { %p1830_p10 = pneg %p1829_p5 }
  0x3c   : > { %p1835_p12 = pnand %p1834_p6, %p1830_p10 }
  0x3e   : > { %1838 = shalt.err (!%p1835_p12)
}
  0x3f   : > { %s1839_s17 = scalar_lea.vmem %s2051_s27, 1024  ;;  %s1928_s21 = smov [#allocation2]  }
  0x40   : > { %p1840_p7 = scmp.ne.s32.totalorder %s2051_s27, %s1839_s17  ;;  %s1844_s22 = sshll.u32 %s1928_s21, 4  ;;  %s1845_s22 = int_to_ptr.vmem [resolvable:$false] %s1844_s22 }
  0x41   : > { %s1846_s23 = scalar_lea.vmem %s1845_s22, 2048  ;;  %p1847_p5 = scmp.lt.s32.totalorder %s2051_s27, %s1845_s22 }
  0x42   : > { %p1842_p9 = pnand %p1840_p7, %p1828_p0  ;;  %p1848_p3 = scmp.lt.s32.totalorder %s1846_s23, %s1839_s17 }
  0x44   : > { %p1843_p13 = pneg %p1842_p9  ;;  %p1849_p4 = por %p1848_p3, %p1847_p5 }
  0x46   : > { %p1850_p8 = pnand %p1849_p4, %p1843_p13 }
  0x48   : > { %1853 = shalt.err (!%p1850_p8)
}
  0x49   : > { %s1929_s24 = smov 128   ;;  %s1930_s26 = smov 8  }
  0x4a   : > { %1571 = dma.hbm_to_vmem [thread:$0]  (!%p2053_p11), %s2049_s25, 1024, %s2051_s27, %s2057_s29, %s1929_s24, %s1929_s24, %s1930_s26  }
  0x4b   : > { %p2444_p0 = scmp.ne.s32.totalorder %s2439_s20, 0 }
  0x4c   : > { %s2081_s30 = sand.u32 (!%p2444_p0), 1, %s1914_s13   ;;  %p2445_p4 = scmp.ne.s32.totalorder (!%p2444_p0), %s2437_s18, 0 }
  0x4d   : > { %180 = sbr.rel (%p2444_p0) target bundleno = 810 (0x32a), region = 32  ;;  %s1383_s4 = sshll.u32 (!%p2444_p0), %s2081_s30, 6 }
  0x4e   : > { %s183_s5 = scalar_lea.sflag (!%p2444_p0), [#allocation3], %s2081_s30  ;;  %s2087_s6 = scalar_lea.vmem (!%p2444_p0), [#allocation2], %s1383_s4 }
  0x52   : > { %1897 = dma.done.wait (%p2445_p4), %s183_s5, 1024  }
  0x53   : > { %1899 = vsyncadd (%p2445_p4), %s183_s5, 4294966272  ;;  %p2446_p8 = scmp.eq.s32.totalorder %s1975_s16, 0 }
  0x55   : > { %1901 = dma.done.wait (%p2446_p8), [#allocation6], 12384   ;;  %p2447_p3 = pmov %p2446_p8 }
  0x56   : > { %v1622_v0 = vld [vmem:[#allocation5 + $0x154] ss:$24 sps:$4 sm:$0xff]   ;;  %v1624_v1 = vld [vmem:[#allocation5 + $0x150] ss:$24 sps:$4 sm:$0xff]   ;;  %v1625_v2 = vld [vmem:[#allocation5 + $0x124] ss:$24 sps:$4 sm:$0xff]  }
  0x57   : > { %1903 = vsyncadd (%p2447_p3), [#allocation6], 4294954912  ;;  %553 = vmatprep.subr.bf16.mxu0 %v1622_v0  ;;  %v1627_v3 = vld [vmem:[#allocation5 + $0x120] ss:$24 sps:$4 sm:$0xff]   ;;  %v1628_v4 = vld [vmem:[#allocation5 + $0xf4] ss:$24 sps:$4 sm:$0xff]  }
  0x58   : > { %554 = vmatpush1.bf16.msra.mxu0 %v1624_v1  ;;  %v1630_v5 = vld [vmem:[#allocation5 + $0xf0] ss:$24 sps:$4 sm:$0xff]   ;;  %v1631_v6 = vld [vmem:[#allocation5 + $0xc4] ss:$24 sps:$4 sm:$0xff]   ;;  %v1633_v7 = vld [vmem:[#allocation5 + $0xc0] ss:$24 sps:$4 sm:$0xff]  }
  0x59   : > { %555 = vmatprep.subr.bf16.mxu0 %v1625_v2  ;;  %v1634_v8 = vld [vmem:[#allocation5 + $0x94] ss:$24 sps:$4 sm:$0xff]   ;;  %v1636_v9 = vld [vmem:[#allocation5 + $0x90] ss:$24 sps:$4 sm:$0xff]   ;;  %v1637_v10 = vld [vmem:[#allocation5 + $0x64] ss:$24 sps:$4 sm:$0xff]  }
  0x5a   : > { %v1639_v11 = vld [vmem:[#allocation5 + $0x60] ss:$24 sps:$4 sm:$0xff]   ;;  %v1640_v12 = vld [vmem:[#allocation5 + $0x34] ss:$24 sps:$4 sm:$0xff]   ;;  %v1642_v16 = vld [vmem:[#allocation5 + $0x30] ss:$24 sps:$4 sm:$0xff]  }
  0x5b   : > { %v2098_v13 = vld [vmem:[%s2087_s6] sm:$0xff]  ;;  %v2101_v14 = vld [vmem:[%s2087_s6 + $0x8] sm:$0xff]  ;;  %v1678_v18 = vld [vmem:[#allocation5 + $0x15c] ss:$24 sps:$4 sm:$0xff]   ;;  %s2344_s18 = scalar_lea.vmem [#allocation8], %s1383_s4  ;;  %s1516_s20 = sshll.u32 %s1975_s16, 10 }
  0x5c   : > { %556 = vmatpush1.bf16.msra.mxu0 %v1627_v3  ;;  %v1388_v15 = vcombine.high %v2098_v13, %v2101_v14  ;;  %v1643_v17 = vld [vmem:[#allocation5 + $0x4] ss:$24 sps:$4 sm:$0xff]   ;;  %v1680_v19 = vld [vmem:[#allocation5 + $0x158] ss:$24 sps:$4 sm:$0xff]   ;;  %837 = vmatprep.subr.bf16.mxu1 %v1678_v18  ;;  %v1646_v22 = vld [vmem:[#allocation5 + $0x2d4] ss:$24 sps:$4 sm:$0xff]   ;;  %v1387_v58 = vcombine.low %v2098_v13, %v2101_v14  ;;  %s2383_s29 = scalar_lea.hbm %s2432_s3, %s1516_s20 }
  0x5d   : > { %557 = vmatprep.subr.bf16.mxu0 %v1628_v4  ;;  %v1645_v20 = vld [vmem:[#allocation5] ss:$24 sps:$4 sm:$0xff]   ;;  %v1681_v21 = vld [vmem:[#allocation5 + $0x12c] ss:$24 sps:$4 sm:$0xff]   ;;  %838 = vmatpush1.bf16.msra.mxu1 %v1680_v19  ;;  %v1684_v24 = vld [vmem:[#allocation5 + $0xfc] ss:$24 sps:$4 sm:$0xff]  }
  0x5e   : > { %585 = vmatprep.mubr.bf16.mxu0 %v1388_v15  ;;  %v1683_v23 = vld [vmem:[#allocation5 + $0x128] ss:$24 sps:$4 sm:$0xff]   ;;  %839 = vmatprep.subr.bf16.mxu1 %v1681_v21  ;;  %v1649_v26 = vld [vmem:[#allocation5 + $0x2a4] ss:$24 sps:$4 sm:$0xff]   ;;  %v1686_v27 = vld [vmem:[#allocation5 + $0xf8] ss:$24 sps:$4 sm:$0xff]  }
  0x5f   : > { %v1648_v25 = vld [vmem:[#allocation5 + $0x2d0] ss:$24 sps:$4 sm:$0xff]   ;;  %v1687_v28 = vld [vmem:[#allocation5 + $0xcc] ss:$24 sps:$4 sm:$0xff]   ;;  %v1651_v29 = vld [vmem:[#allocation5 + $0x2a0] ss:$24 sps:$4 sm:$0xff]  }
  0x60   : > { %558 = vmatpush1.bf16.msra.mxu0 %v1630_v5  ;;  %v1652_v30 = vld [vmem:[#allocation5 + $0x274] ss:$24 sps:$4 sm:$0xff]   ;;  %v1689_v31 = vld [vmem:[#allocation5 + $0xc8] ss:$24 sps:$4 sm:$0xff]   ;;  %v1655_v34 = vld [vmem:[#allocation5 + $0x244] ss:$24 sps:$4 sm:$0xff]  }
  0x61   : > { %559 = vmatprep.subr.bf16.mxu0 %v1631_v6  ;;  %840 = vmatpush1.bf16.msra.mxu1 %v1683_v23  ;;  %v1690_v32 = vld [vmem:[#allocation5 + $0x9c] ss:$24 sps:$4 sm:$0xff]   ;;  %v1654_v33 = vld [vmem:[#allocation5 + $0x270] ss:$24 sps:$4 sm:$0xff]   ;;  %v1693_v36 = vld [vmem:[#allocation5 + $0x6c] ss:$24 sps:$4 sm:$0xff]  }
  0x62   : > { %841 = vmatprep.subr.bf16.mxu1 %v1684_v24  ;;  %v1692_v35 = vld [vmem:[#allocation5 + $0x98] ss:$24 sps:$4 sm:$0xff]   ;;  %v1695_v38 = vld [vmem:[#allocation5 + $0x68] ss:$24 sps:$4 sm:$0xff]   ;;  %v1658_v39 = vld [vmem:[#allocation5 + $0x214] ss:$24 sps:$4 sm:$0xff]  }
  0x63   : > { %v1657_v37 = vld [vmem:[#allocation5 + $0x240] ss:$24 sps:$4 sm:$0xff]   ;;  %v1696_v40 = vld [vmem:[#allocation5 + $0x3c] ss:$24 sps:$4 sm:$0xff]   ;;  %v1660_v41 = vld [vmem:[#allocation5 + $0x210] ss:$24 sps:$4 sm:$0xff]  }
  0x64   : > { %560 = vmatpush1.bf16.msra.mxu0 %v1633_v7  ;;  %v1698_v42 = vld [vmem:[#allocation5 + $0x38] ss:$24 sps:$4 sm:$0xff]   ;;  %v1661_v43 = vld [vmem:[#allocation5 + $0x1e4] ss:$24 sps:$4 sm:$0xff]   ;;  %v1701_v46 = vld [vmem:[#allocation5 + $0x8] ss:$24 sps:$4 sm:$0xff]  }
  0x65   : > { %561 = vmatprep.subr.bf16.mxu0 %v1634_v8  ;;  %842 = vmatpush1.bf16.msra.mxu1 %v1686_v27  ;;  %v1699_v44 = vld [vmem:[#allocation5 + $0xc] ss:$24 sps:$4 sm:$0xff]   ;;  %v1663_v45 = vld [vmem:[#allocation5 + $0x1e0] ss:$24 sps:$4 sm:$0xff]   ;;  %v1702_v48 = vld [vmem:[#allocation5 + $0x2dc] ss:$24 sps:$4 sm:$0xff]  }
  0x66   : > { %843 = vmatprep.subr.bf16.mxu1 %v1687_v28  ;;  %v1664_v47 = vld [vmem:[#allocation5 + $0x1b4] ss:$24 sps:$4 sm:$0xff]   ;;  %v1666_v49 = vld [vmem:[#allocation5 + $0x1b0] ss:$24 sps:$4 sm:$0xff]   ;;  %v1667_v51 = vld [vmem:[#allocation5 + $0x184] ss:$24 sps:$4 sm:$0xff]  }
  0x67   : > { %v1704_v50 = vld [vmem:[#allocation5 + $0x2d8] ss:$24 sps:$4 sm:$0xff]   ;;  %v1705_v52 = vld [vmem:[#allocation5 + $0x2ac] ss:$24 sps:$4 sm:$0xff]   ;;  %v1707_v54 = vld [vmem:[#allocation5 + $0x2a8] ss:$24 sps:$4 sm:$0xff]  }
  0x68   : > { %562 = vmatpush1.bf16.msra.mxu0 %v1636_v9  ;;  %v1669_v53 = vld [vmem:[#allocation5 + $0x180] ss:$24 sps:$4 sm:$0xff]   ;;  %v2106_v55 = vld [vmem:[%s2087_s6 + $0x10] sm:$0xff]  ;;  %v1711_v61 = vld [vmem:[#allocation5 + $0x24c] ss:$24 sps:$4 sm:$0xff]   ;;  %s1281_s25 = sshll.u32 %s2344_s18, 4  ;;  %s2385_s25 = int_to_ptr.vmem [resolvable:$true] %s1281_s25 }
  0x69   : > { %563 = vmatprep.subr.bf16.mxu0 %v1637_v10  ;;  %844 = vmatpush1.bf16.msra.mxu1 %v1689_v31  ;;  %v2109_v56 = vld [vmem:[%s2087_s6 + $0x18] sm:$0xff]  ;;  %v1713_v62 = vld [vmem:[#allocation5 + $0x248] ss:$24 sps:$4 sm:$0xff]   ;;  %v2126_v3 = vld [vmem:[%s2087_s6 + $0x30] sm:$0xff]  ;;  %s1267_s8 = scalar_lea.sflag [#allocation4], %s2081_s30  ;;  %s1854_s16 = scalar_lea.vmem %s2385_s25, 1024 }
  0x6a   : > { %845 = vmatprep.subr.bf16.mxu1 %v1690_v32  ;;  %v1708_v57 = vld [vmem:[#allocation5 + $0x27c] ss:$24 sps:$4 sm:$0xff]   ;;  %v1390_v59 = vcombine.high %v2106_v55, %v2109_v56  ;;  %v1710_v60 = vld [vmem:[#allocation5 + $0x278] ss:$24 sps:$4 sm:$0xff]   ;;  %v2116_v63 = vld [vmem:[%s2087_s6 + $0x20] sm:$0xff]  ;;  %v1389_v1 = vcombine.low %v2106_v55, %v2109_v56  ;;  %p1855_p11 = scmp.ne.s32.totalorder %s2385_s25, %s1854_s16  ;;  %p2448_p10 = scmp.ne.s32.totalorder %s2442_s10, 0 }
  0x6b   : > { %v2119_v0 = vld [vmem:[%s2087_s6 + $0x28] sm:$0xff]  ;;  %v2129_v4 = vld [vmem:[%s2087_s6 + $0x38] sm:$0xff]  ;;  %s1931_s9 = smov [#allocation8]  }
  0x6c   : > { %564 = vmatpush1.bf16.msra.mxu0 %v1639_v11  ;;  %v1392_v2 = vcombine.high %v2116_v63, %v2119_v0  ;;  %v1391_v5 = vcombine.low %v2116_v63, %v2119_v0  ;;  %v1394_v6 = vcombine.high %v2126_v3, %v2129_v4  ;;  %v1393_v7 = vcombine.low %v2126_v3, %v2129_v4  ;;  %v1714_v8 = vld [vmem:[#allocation5 + $0x21c] ss:$24 sps:$4 sm:$0xff]   ;;  %v1716_v9 = vld [vmem:[#allocation5 + $0x218] ss:$24 sps:$4 sm:$0xff]   ;;  %v1717_v10 = vld [vmem:[#allocation5 + $0x1ec] ss:$24 sps:$4 sm:$0xff]   ;;  %p1856_p1 = pnand %p1855_p11, %p2448_p10 }
  0x6d   : > { %565 = vmatprep.subr.bf16.mxu0 %v1640_v12  ;;  %846 = vmatpush1.bf16.msra.mxu1 %v1692_v35  ;;  %v1719_v11 = vld [vmem:[#allocation5 + $0x1e8] ss:$24 sps:$4 sm:$0xff]   ;;  %v1720_v12 = vld [vmem:[#allocation5 + $0x1bc] ss:$24 sps:$4 sm:$0xff]   ;;  %v1722_v15 = vld [vmem:[#allocation5 + $0x1b8] ss:$24 sps:$4 sm:$0xff]  }
  0x6e   : > { %847 = vmatprep.subr.bf16.mxu1 %v1693_v36  ;;  %v2137_v18 = vld [vmem:[#allocation5 + $0x160] ss:$24 sps:$4 sm:$0xff]   ;;  %v1728_v19 = vld [vmem:[#allocation5 + $0x164] ss:$24 sps:$4 sm:$0xff]   ;;  %v2142_v21 = vld [vmem:[#allocation5 + $0x130] ss:$24 sps:$4 sm:$0xff]   ;;  %p1857_p2 = pneg %p1856_p1 }
  0x6f   : > { %v2148_v23 = vld [vmem:[#allocation5 + $0x100] ss:$24 sps:$4 sm:$0xff]   ;;  %v2151_v24 = vld [vmem:[#allocation5 + $0xd4] ss:$24 sps:$4 sm:$0xff]   ;;  %s1858_s17 = sshll.u32 %s1931_s9, 4  ;;  %s1859_s17 = int_to_ptr.vmem [resolvable:$false] %s1858_s17 }
  0x70   : > { %566 = vmatpush1.bf16.msra.mxu0 %v1642_v16  ;;  %v1723_v16 = vld [vmem:[#allocation5 + $0x18c] ss:$24 sps:$4 sm:$0xff]   ;;  %v2160_v27 = vld [vmem:[#allocation5 + $0xa0] ss:$24 sps:$4 sm:$0xff]   ;;  %s1860_s21 = scalar_lea.vmem %s1859_s17, 2048  ;;  %p1861_p6 = scmp.lt.s32.totalorder %s2385_s25, %s1859_s17 }
  0x71   : > { %567 = vmatprep.subr.bf16.mxu0 %v1643_v17  ;;  %848 = vmatpush1.bf16.msra.mxu1 %v1695_v38  ;;  %v1725_v17 = vld [vmem:[#allocation5 + $0x188] ss:$24 sps:$4 sm:$0xff]   ;;  %v2163_v28 = vld [vmem:[#allocation5 + $0x74] ss:$24 sps:$4 sm:$0xff]   ;;  %v2193_v38 = vld [vmem:[#allocation5 + $0x284] ss:$24 sps:$4 sm:$0xff]   ;;  %p1862_p12 = scmp.lt.s32.totalorder %s1860_s21, %s1854_s16 }
  0x72   : > { %849 = vmatprep.subr.bf16.mxu1 %v1696_v40  ;;  %v2172_v31 = vld [vmem:[#allocation5 + $0x40] ss:$24 sps:$4 sm:$0xff]   ;;  %v2175_v32 = vld [vmem:[#allocation5 + $0x14] ss:$24 sps:$4 sm:$0xff]  }
  0x73   : > { %v2184_v35 = vld [vmem:[#allocation5 + $0x2e0] ss:$24 sps:$4 sm:$0xff]   ;;  %v2187_v36 = vld [vmem:[#allocation5 + $0x2b4] ss:$24 sps:$4 sm:$0xff]   ;;  %p1863_p7 = por %p1862_p12, %p1861_p6 }
  0x74   : > { %568 = vmatpush1.bf16.msra.mxu0 %v1645_v20  ;;  %v2139_v20 = vld [vmem:[#allocation5 + $0x134] ss:$24 sps:$4 sm:$0xff]  }
  0x75   : > { %569 = vmatprep.subr.bf16.mxu0 %v1646_v22  ;;  %850 = vmatpush1.bf16.msra.mxu1 %v1698_v42  ;;  %v2145_v22 = vld [vmem:[#allocation5 + $0x104] ss:$24 sps:$4 sm:$0xff]   ;;  %v2199_v40 = vld [vmem:[#allocation5 + $0x254] ss:$24 sps:$4 sm:$0xff]   ;;  %p1864_p9 = pnand %p1863_p7, %p1857_p2 }
  0x76   : > { %851 = vmatprep.subr.bf16.mxu1 %v1699_v44  ;;  %v2205_v42 = vld [vmem:[#allocation5 + $0x224] ss:$24 sps:$4 sm:$0xff]   ;;  %v343_v44 = vlaneseq }
  0x78   : > { %570 = vmatpush2.bf16.msra.mxu0 %v1648_v25  ;;  %v2154_v25 = vld [vmem:[#allocation5 + $0xd0] ss:$24 sps:$4 sm:$0xff]  }
  0x79   : > { %571 = vmatprep.subr.bf16.mxu0 %v1649_v26  ;;  %852 = vmatpush1.bf16.msra.mxu1 %v1701_v46  ;;  %v2157_v26 = vld [vmem:[#allocation5 + $0xa4] ss:$24 sps:$4 sm:$0xff]  }
  0x7a   : > { %853 = vmatprep.subr.bf16.mxu1 %v1702_v48  ;;  %v339_v48 = vld [vmem:[#allocation7] sm:$0x3] }
  0x7c   : > { %572 = vmatpush2.bf16.msra.mxu0 %v1651_v29  ;;  %v2166_v29 = vld [vmem:[#allocation5 + $0x70] ss:$24 sps:$4 sm:$0xff]  }
  0x7d   : > { %573 = vmatprep.subr.bf16.mxu0 %v1652_v30  ;;  %854 = vmatpush2.bf16.msra.mxu1 %v1704_v50  ;;  %v2169_v30 = vld [vmem:[#allocation5 + $0x44] ss:$24 sps:$4 sm:$0xff]  }
  0x7e   : > { %855 = vmatprep.subr.bf16.mxu1 %v1705_v52 }
  0x80   : > { %574 = vmatpush2.bf16.msra.mxu0 %v1654_v33  ;;  %v2178_v33 = vld [vmem:[#allocation5 + $0x10] ss:$24 sps:$4 sm:$0xff]  }
  0x81   : > { %575 = vmatprep.subr.bf16.mxu0 %v1655_v34  ;;  %856 = vmatpush2.bf16.msra.mxu1 %v1707_v54  ;;  %v2181_v34 = vld [vmem:[#allocation5 + $0x2e4] ss:$24 sps:$4 sm:$0xff]  }
  0x82   : > { %857 = vmatprep.subr.bf16.mxu1 %v1708_v57 }
  0x84   : > { %576 = vmatpush2.bf16.msra.mxu0 %v1657_v37  ;;  %v2190_v37 = vld [vmem:[#allocation5 + $0x2b0] ss:$24 sps:$4 sm:$0xff]  }
  0x85   : > { %577 = vmatprep.subr.bf16.mxu0 %v1658_v39  ;;  %858 = vmatpush2.bf16.msra.mxu1 %v1710_v60  ;;  %v2196_v39 = vld [vmem:[#allocation5 + $0x280] ss:$24 sps:$4 sm:$0xff]  }
  0x86   : > { %859 = vmatprep.subr.bf16.mxu1 %v1711_v61  ;;  %v228_v61 = vunpack.c.h.bf16 %v2098_v13 }
  0x88   : > { %578 = vmatpush2.bf16.msra.mxu0 %v1660_v41  ;;  %v2202_v41 = vld [vmem:[#allocation5 + $0x250] ss:$24 sps:$4 sm:$0xff]  }
  0x89   : > { %579 = vmatprep.subr.bf16.mxu0 %v1661_v43  ;;  %860 = vmatpush2.bf16.msra.mxu1 %v1713_v62  ;;  %v2208_v43 = vld [vmem:[#allocation5 + $0x220] ss:$24 sps:$4 sm:$0xff]  }
  0x8a   : > { %861 = vmatprep.subr.bf16.mxu1 %v1714_v8 }
  0x8c   : > { %580 = vmatpush2.bf16.msra.mxu0 %v1663_v45  ;;  %v344_v45 = vshrl.u32 %v343_v44, 7 }
  0x8d   : > { %581 = vmatprep.subr.bf16.mxu0 %v1664_v47  ;;  %862 = vmatpush2.bf16.msra.mxu1 %v1716_v9 }
  0x8e   : > { %863 = vmatprep.subr.bf16.mxu1 %v1717_v10  ;;  %v2212_v46 = vsub.s32 1, %v344_v45  ;;  %v2214_v47 = vsub.s32 0, %v344_v45  ;;  %v232_v45 = vunpack.c.h.bf16 %v2106_v55 }
  0x90   : > { %582 = vmatpush2.bf16.msra.mxu0 %v1666_v49  ;;  %v2217_v49 = vrot.slane %v339_v48, %v2212_v46  ;;  %v2220_v50 = vrot.slane %v339_v48, %v2214_v47  ;;  %v233_v48 = vunpack.c.l.bf16 %v2109_v56 }
  0x91   : > { %583 = vmatprep.subr.bf16.mxu0 %v1667_v51  ;;  %864 = vmatpush2.bf16.msra.mxu1 %v1719_v11 }
  0x92   : > { %865 = vmatprep.subr.bf16.mxu1 %v1720_v12 }
  0x94   : > { %584 = vmatpush2.bf16.msra.mxu0 %v1669_v53 }
  0x95   : > { %866 = vmatpush2.bf16.msra.mxu1 %v1722_v15  ;;  %1105 = vmatprep.subr.bf16.mxu0 %v1728_v19 }
  0x96   : > { %867 = vmatprep.subr.bf16.mxu1 %v1723_v16 }
  0x97   : > { %586 = vmatmul.mubr.bf16.vlgmr.msra.gmra.mxu0 %v1387_v58 }
  0x98   : > { %595 = vmatprep.mubr.bf16.mxu0 %v1390_v59  ;;  %1106 = vmatpush1.bf16.msra.mxu0 %v2137_v18  ;;  %v229_v59 = vunpack.c.l.bf16 %v2101_v14 }
  0x99   : > { %868 = vmatpush2.bf16.msra.mxu1 %v1725_v17  ;;  %1107 = vmatprep.subr.bf16.mxu0 %v2139_v20 }
  0x9a   : > { %1517 = vmatprep.subr.bf16.mxu1 %v1728_v19 }
  0x9c   : > { %1108 = vmatpush1.bf16.msra.mxu0 %v2142_v21 }
  0x9d   : > { %1109 = vmatprep.subr.bf16.mxu0 %v2145_v22 }
  0x9f   : > { %596 = vmatmul.mubr.bf16.gmra.mxu0 %v1389_v1 }
  0xa0   : > { %605 = vmatprep.mubr.bf16.mxu0 %v1392_v2  ;;  %1110 = vmatpush1.bf16.msra.mxu0 %v2148_v23 }
  0xa1   : > { %1111 = vmatprep.subr.bf16.mxu0 %v2151_v24 }
  0xa4   : > { %1112 = vmatpush1.bf16.msra.mxu0 %v2154_v25 }
  0xa5   : > { %1113 = vmatprep.subr.bf16.mxu0 %v2157_v26 }
  0xa7   : > { %606 = vmatmul.mubr.bf16.gmra.mxu0 %v1391_v5  ;;  %v230_v5 = vunpack.c.h.bf16 %v2101_v14 }
  0xa8   : > { %615 = vmatprep.mubr.bf16.mxu0 %v1394_v6  ;;  %1114 = vmatpush1.bf16.msra.mxu0 %v2160_v27  ;;  %v227_v6 = vunpack.c.l.bf16 %v2098_v13 }
  0xa9   : > { %1115 = vmatprep.subr.bf16.mxu0 %v2163_v28 }
  0xac   : > { %1116 = vmatpush1.bf16.msra.mxu0 %v2166_v29 }
  0xad   : > { %1117 = vmatprep.subr.bf16.mxu0 %v2169_v30 }
  0xaf   : > { %616 = vmatmul.mubr.bf16.gmra.mxu0 %v1393_v7 }
  0xb0   : > { %1118 = vmatpush1.bf16.msra.mxu0 %v2172_v31 }
  0xb1   : > { %1119 = vmatprep.subr.bf16.mxu0 %v2175_v32 }
  0xb4   : > { %1120 = vmatpush1.bf16.msra.mxu0 %v2178_v33 }
  0xb5   : > { %1121 = vmatprep.subr.bf16.mxu0 %v2181_v34 }
  0xb8   : > { %1122 = vmatpush2.bf16.msra.mxu0 %v2184_v35 }
  0xb9   : > { %1123 = vmatprep.subr.bf16.mxu0 %v2187_v36 }
  0xbc   : > { %1124 = vmatpush2.bf16.msra.mxu0 %v2190_v37 }
  0xbd   : > { %1125 = vmatprep.subr.bf16.mxu0 %v2193_v38 }
  0xc0   : > { %1126 = vmatpush2.bf16.msra.mxu0 %v2196_v39 }
  0xc1   : > { %1127 = vmatprep.subr.bf16.mxu0 %v2199_v40 }
  0xc4   : > { %1128 = vmatpush2.bf16.msra.mxu0 %v2202_v41 }
  0xc5   : > { %1129 = vmatprep.subr.bf16.mxu0 %v2205_v42 }
  0xc8   : > { %1130 = vmatpush2.bf16.msra.mxu0 %v2208_v43 }
 0x157   : > { %v587_v51 = vpop.f32.mrf.mxu0 }
 0x158   : > { %v588_v54 = vadd.f32 %v587_v51, %v2220_v50 }
 0x159   : > { %v589_v52 = vpop.f32.mrf.mxu0 }
 0x15a   : > { %v590_v53 = vadd.f32 %v589_v52, %v2217_v49  ;;  %v626_v7 = vmax.f32 %v588_v54, 0.0 }
 0x15b   : > { %v591_v57 = vpop.f32.mrf.mxu0 }
 0x15c   : > { %v592_v58 = vadd.f32 %v591_v57, %v2220_v50  ;;  %v627_v62 = vmax.f32 %v590_v53, 0.0  ;;  %v2237_v17 = vadd.f32 %v626_v7, %v227_v6  ;;  %v234_v57 = vunpack.c.h.bf16 %v2109_v56 }
 0x15d   : > { %v593_v60 = vpop.f32.mrf.mxu0 }
 0x15e   : > { %v628_v1 = vmax.f32 %v592_v58, 0.0  ;;  %v594_v2 = vadd.f32 %v593_v60, %v2217_v49  ;;  %v2233_v15 = vadd.f32 %v627_v62, %v228_v61 }
 0x15f   : > { %v597_v8 = vpop.f32.mrf.mxu0 }
 0x160   : > { %v629_v9 = vmax.f32 %v594_v2, 0.0  ;;  %v2230_v10 = vadd.f32 %v628_v1, %v229_v59  ;;  %v598_v19 = vadd.f32 %v597_v8, %v2220_v50  ;;  %v231_v59 = vunpack.c.l.bf16 %v2106_v55 }
 0x161   : > { %v599_v11 = vpop.f32.mrf.mxu0 }
 0x162   : > { %v600_v12 = vadd.f32 %v599_v11, %v2217_v49  ;;  %v2235_v16 = vadd.f32 %v629_v9, %v230_v5  ;;  %v658_v52 = vpack.c.bf16 %v2230_v10, %v2237_v17  ;;  %v630_v60 = vmax.f32 %v598_v19, 0.0 }
 0x163   : > { %v601_v44 = vpop.f32.mrf.mxu0  ;;  %v237_v11 = vunpack.c.l.bf16 %v2119_v0 }
 0x164   : > { %v602_v14 = vadd.f32 %v601_v44, %v2220_v50  ;;  %v659_v13 = vpack.c.bf16 %v2235_v16, %v2233_v15  ;;  %v631_v53 = vmax.f32 %v600_v12, 0.0  ;;  %v2259_v7 = vadd.f32 %v630_v60, %v231_v59 }
 0x165   : > { %v603_v51 = vpop.f32.mrf.mxu0 }
 0x166   : > { %v632_v54 = vmax.f32 %v602_v14, 0.0  ;;  %v604_v58 = vadd.f32 %v603_v51, %v2217_v49  ;;  %869 = vmatprep.mubr.bf16.mxu1 %v659_v13  ;;  %v2254_v5 = vadd.f32 %v631_v53, %v232_v45  ;;  %v238_v13 = vunpack.c.h.bf16 %v2119_v0 }
 0x167   : > { %v607_v61 = vpop.f32.mrf.mxu0  ;;  %870 = vmatmul.mubr.bf16.vlgmr.msra.gmra.mxu1 %v658_v52 }
 0x168   : > { %v633_v62 = vmax.f32 %v604_v58, 0.0  ;;  %1533 = vmatpush1.bf16.msra.mxu1 %v2137_v18  ;;  %v2251_v1 = vadd.f32 %v632_v54, %v233_v48  ;;  %v608_v55 = vadd.f32 %v607_v61, %v2220_v50  ;;  %v235_v48 = vunpack.c.l.bf16 %v2116_v63 }
 0x169   : > { %v609_v2 = vpop.f32.mrf.mxu0  ;;  %1518 = vmatprep.subr.bf16.mxu1 %v2139_v20  ;;  %v236_v20 = vunpack.c.h.bf16 %v2116_v63  ;;  %v241_v61 = vunpack.c.l.bf16 %v2129_v4 }
 0x16a   : > { %v2256_v6 = vadd.f32 %v633_v62, %v234_v57  ;;  %v610_v56 = vadd.f32 %v609_v2, %v2217_v49  ;;  %v660_v19 = vpack.c.bf16 %v2251_v1, %v2259_v7 }
 0x16b   : > { %v611_v8 = vpop.f32.mrf.mxu0 }
 0x16c   : > { %v612_v9 = vadd.f32 %v611_v8, %v2220_v50  ;;  %v661_v18 = vpack.c.bf16 %v2256_v6, %v2254_v5  ;;  %1534 = vmatpush1.bf16.msra.mxu1 %v2142_v21  ;;  %v635_v44 = vmax.f32 %v610_v56, 0.0  ;;  %v634_v21 = vmax.f32 %v608_v55, 0.0 }
 0x16d   : > { %v613_v12 = vpop.f32.mrf.mxu0  ;;  %1519 = vmatprep.subr.bf16.mxu1 %v2145_v22  ;;  %v242_v8 = vunpack.c.h.bf16 %v2129_v4 }
 0x16e   : > { %v636_v14 = vmax.f32 %v612_v9, 0.0  ;;  %v614_v45 = vadd.f32 %v613_v12, %v2217_v49  ;;  %879 = vmatprep.mubr.bf16.mxu1 %v661_v18  ;;  %v2278_v22 = vadd.f32 %v635_v44, %v236_v20  ;;  %v2283_v58 = vadd.f32 %v634_v21, %v235_v48 }
 0x16f   : > { %v617_v51 = vpop.f32.mrf.mxu0  ;;  %880 = vmatmul.mubr.bf16.gmra.mxu1 %v660_v19  ;;  %v239_v9 = vunpack.c.l.bf16 %v2126_v3 }
 0x170   : > { %v637_v52 = vmax.f32 %v614_v45, 0.0  ;;  %1535 = vmatpush1.bf16.msra.mxu1 %v2148_v23  ;;  %v2275_v53 = vadd.f32 %v636_v14, %v237_v11  ;;  %v618_v63 = vadd.f32 %v617_v51, %v2220_v50 }
 0x171   : > { %v619_v54 = vpop.f32.mrf.mxu0  ;;  %1520 = vmatprep.subr.bf16.mxu1 %v2151_v24  ;;  %v240_v24 = vunpack.c.h.bf16 %v2126_v3 }
 0x172   : > { %v2280_v57 = vadd.f32 %v637_v52, %v238_v13  ;;  %v620_v0 = vadd.f32 %v619_v54, %v2217_v49  ;;  %v662_v2 = vpack.c.bf16 %v2275_v53, %v2283_v58 }
 0x173   : > { %v621_v59 = vpop.f32.mrf.mxu0 }
 0x174   : > { %v622_v60 = vadd.f32 %v621_v59, %v2220_v50  ;;  %v663_v23 = vpack.c.bf16 %v2280_v57, %v2278_v22  ;;  %1536 = vmatpush1.bf16.msra.mxu1 %v2154_v25  ;;  %v639_v56 = vmax.f32 %v620_v0, 0.0  ;;  %v638_v25 = vmax.f32 %v618_v63, 0.0 }
 0x175   : > { %v623_v62 = vpop.f32.mrf.mxu0  ;;  %1521 = vmatprep.subr.bf16.mxu1 %v2157_v26 }
 0x176   : > { %v640_v55 = vmax.f32 %v622_v60, 0.0  ;;  %v624_v50 = vadd.f32 %v623_v62, %v2217_v49  ;;  %889 = vmatprep.mubr.bf16.mxu1 %v663_v23  ;;  %v2302_v11 = vadd.f32 %v639_v56, %v240_v24  ;;  %v2306_v12 = vadd.f32 %v638_v25, %v239_v9 }
 0x177   : > { %890 = vmatmul.mubr.bf16.gmra.mxu1 %v662_v2 }
 0x178   : > { %v641_v18 = vmax.f32 %v624_v50, 0.0  ;;  %1537 = vmatpush1.bf16.msra.mxu1 %v2160_v27  ;;  %v2299_v20 = vadd.f32 %v640_v55, %v241_v61  ;;  %v1767_v27 = vld [vmem:[#allocation5 + $0x1f4] ss:$24 sps:$4 sm:$0xff]  }
 0x179   : > { %1522 = vmatprep.subr.bf16.mxu1 %v2163_v28  ;;  %v1765_v28 = vld [vmem:[#allocation5 + $0x1f0] ss:$24 sps:$4 sm:$0xff]   ;;  %1131 = vmatprep.subr.bf16.mxu0 %v1767_v27 }
 0x17a   : > { %v2304_v26 = vadd.f32 %v641_v18, %v242_v8  ;;  %v664_v3 = vpack.c.bf16 %v2299_v20, %v2306_v12  ;;  %1132 = vmatpush2.bf16.msra.mxu0 %v1765_v28 }
 0x17c   : > { %v665_v4 = vpack.c.bf16 %v2304_v26, %v2302_v11  ;;  %1538 = vmatpush1.bf16.msra.mxu1 %v2166_v29  ;;  %v1770_v29 = vld [vmem:[#allocation5 + $0x1c4] ss:$24 sps:$4 sm:$0xff]  }
 0x17d   : > { %1523 = vmatprep.subr.bf16.mxu1 %v2169_v30  ;;  %v1768_v30 = vld [vmem:[#allocation5 + $0x1c0] ss:$24 sps:$4 sm:$0xff]   ;;  %1133 = vmatprep.subr.bf16.mxu0 %v1770_v29 }
 0x17e   : > { %899 = vmatprep.mubr.bf16.mxu1 %v665_v4  ;;  %1134 = vmatpush2.bf16.msra.mxu0 %v1768_v30 }
 0x17f   : > { %900 = vmatmul.mubr.bf16.gmra.mxu1 %v664_v3 }
 0x180   : > { %1539 = vmatpush1.bf16.msra.mxu1 %v2172_v31  ;;  %v1773_v31 = vld [vmem:[#allocation5 + $0x194] ss:$24 sps:$4 sm:$0xff]  }
 0x181   : > { %1524 = vmatprep.subr.bf16.mxu1 %v2175_v32  ;;  %v1771_v32 = vld [vmem:[#allocation5 + $0x190] ss:$24 sps:$4 sm:$0xff]   ;;  %1135 = vmatprep.subr.bf16.mxu0 %v1773_v31 }
 0x182   : > { %1136 = vmatpush2.bf16.msra.mxu0 %v1771_v32 }
 0x184   : > { %1540 = vmatpush1.bf16.msra.mxu1 %v2178_v33  ;;  %v340_v33 = vld [vmem:[#allocation7 + $0x2] sm:$0x3] }
 0x185   : > { %1525 = vmatprep.subr.bf16.mxu1 %v2181_v34 }
 0x188   : > { %1541 = vmatpush2.bf16.msra.mxu1 %v2184_v35  ;;  %v674_v35 = vrot.slane %v340_v33, %v2212_v46 }
 0x189   : > { %1526 = vmatprep.subr.bf16.mxu1 %v2187_v36  ;;  %v670_v36 = vrot.slane %v340_v33, %v2214_v47 }
 0x18c   : > { %1542 = vmatpush2.bf16.msra.mxu1 %v2190_v37 }
 0x18d   : > { %1527 = vmatprep.subr.bf16.mxu1 %v2193_v38 }
 0x190   : > { %1543 = vmatpush2.bf16.msra.mxu1 %v2196_v39 }
 0x191   : > { %1528 = vmatprep.subr.bf16.mxu1 %v2199_v40 }
 0x194   : > { %1544 = vmatpush2.bf16.msra.mxu1 %v2202_v41 }
 0x195   : > { %1529 = vmatprep.subr.bf16.mxu1 %v2205_v42 }
 0x198   : > { %1545 = vmatpush2.bf16.msra.mxu1 %v2208_v43 }
 0x199   : > { %1530 = vmatprep.subr.bf16.mxu1 %v1767_v27 }
 0x19c   : > { %1546 = vmatpush2.bf16.msra.mxu1 %v1765_v28 }
 0x19d   : > { %1531 = vmatprep.subr.bf16.mxu1 %v1770_v29 }
 0x1a0   : > { %1547 = vmatpush2.bf16.msra.mxu1 %v1768_v30 }
 0x1a1   : > { %1532 = vmatprep.subr.bf16.mxu1 %v1773_v31 }
 0x1a4   : > { %1548 = vmatpush2.bf16.msra.mxu1 %v1771_v32 }
 0x227   : > { %v871_v34 = vpop.f32.mrf.mxu1 }
 0x228   : > { %v872_v41 = vadd.f32 %v871_v34, %v670_v36 }
 0x229   : > { %v873_v37 = vpop.f32.mrf.mxu1 }
 0x22a   : > { %v874_v39 = vadd.f32 %v873_v37, %v674_v35  ;;  %v910_v13 = vmax.f32 %v872_v41, 0.0 }
 0x22b   : > { %v875_v38 = vpop.f32.mrf.mxu1 }
 0x22c   : > { %v876_v40 = vadd.f32 %v875_v38, %v670_v36  ;;  %v911_v44 = vmax.f32 %v874_v39, 0.0 }
 0x22d   : > { %v877_v42 = vpop.f32.mrf.mxu1 }
 0x22e   : > { %v878_v43 = vadd.f32 %v877_v42, %v674_v35  ;;  %v912_v49 = vmax.f32 %v876_v40, 0.0 }
 0x22f   : > { %v881_v19 = vpop.f32.mrf.mxu1 }
 0x230   : > { %v913_v14 = vmax.f32 %v878_v43, 0.0  ;;  %v926_v21 = vpack.c.bf16 %v912_v49, %v910_v13  ;;  %v882_v0 = vadd.f32 %v881_v19, %v670_v36  ;;  %v341_v13 = vld [vmem:[#allocation7 + $0x4] sm:$0x3] }
 0x231   : > { %v883_v45 = vpop.f32.mrf.mxu1 }
 0x232   : > { %v927_v48 = vpack.c.bf16 %v913_v14, %v911_v44  ;;  %v884_v52 = vadd.f32 %v883_v45, %v674_v35  ;;  %v914_v62 = vmax.f32 %v882_v0, 0.0  ;;  %v2330_v45 = vrot.slane %v341_v13, %v2214_v47 }
 0x233   : > { %v885_v51 = vpop.f32.mrf.mxu1 }
 0x234   : > { %v886_v54 = vadd.f32 %v885_v51, %v670_v36  ;;  %1137 = vmatprep.mubr.bf16.mxu0 %v927_v48  ;;  %v915_v24 = vmax.f32 %v884_v52, 0.0  ;;  %v2333_v48 = vrot.slane %v341_v13, %v2212_v46 }
 0x235   : > { %v887_v63 = vpop.f32.mrf.mxu1  ;;  %1138 = vmatmul.mubr.bf16.vlgmr.msra.gmra.mxu0 %v926_v21 }
 0x236   : > { %v888_v59 = vadd.f32 %v887_v63, %v674_v35  ;;  %v916_v60 = vmax.f32 %v886_v54, 0.0 }
 0x237   : > { %v891_v23 = vpop.f32.mrf.mxu1 }
 0x238   : > { %v917_v61 = vmax.f32 %v888_v59, 0.0  ;;  %v928_v55 = vpack.c.bf16 %v916_v60, %v914_v62  ;;  %v892_v25 = vadd.f32 %v891_v23, %v670_v36 }
 0x239   : > { %v893_v2 = vpop.f32.mrf.mxu1 }
 0x23a   : > { %v929_v56 = vpack.c.bf16 %v917_v61, %v915_v24  ;;  %v894_v50 = vadd.f32 %v893_v2, %v674_v35  ;;  %v918_v30 = vmax.f32 %v892_v25, 0.0 }
 0x23b   : > { %v895_v8 = vpop.f32.mrf.mxu1 }
 0x23c   : > { %v896_v9 = vadd.f32 %v895_v8, %v670_v36  ;;  %1147 = vmatprep.mubr.bf16.mxu0 %v929_v56  ;;  %v919_v28 = vmax.f32 %v894_v50, 0.0 }
 0x23d   : > { %v897_v18 = vpop.f32.mrf.mxu1  ;;  %1148 = vmatmul.mubr.bf16.gmra.mxu0 %v928_v55 }
 0x23e   : > { %v898_v4 = vadd.f32 %v897_v18, %v674_v35  ;;  %v920_v3 = vmax.f32 %v896_v9, 0.0 }
 0x23f   : > { %v901_v27 = vpop.f32.mrf.mxu1 }
 0x240   : > { %v921_v29 = vmax.f32 %v898_v4, 0.0  ;;  %v930_v33 = vpack.c.bf16 %v920_v3, %v918_v30  ;;  %v902_v39 = vadd.f32 %v901_v27, %v670_v36 }
 0x241   : > { %v903_v31 = vpop.f32.mrf.mxu1 }
 0x242   : > { %v931_v32 = vpack.c.bf16 %v921_v29, %v919_v28  ;;  %v904_v37 = vadd.f32 %v903_v31, %v674_v35  ;;  %v922_v19 = vmax.f32 %v902_v39, 0.0 }
 0x243   : > { %v905_v34 = vpop.f32.mrf.mxu1 }
 0x244   : > { %v906_v38 = vadd.f32 %v905_v34, %v670_v36  ;;  %1157 = vmatprep.mubr.bf16.mxu1 %v931_v32  ;;  %v923_v43 = vmax.f32 %v904_v37, 0.0 }
 0x245   : > { %v907_v40 = vpop.f32.mrf.mxu1  ;;  %1158 = vmatmul.mubr.bf16.vlgmr.msra.gmra.mxu1 %v930_v33 }
 0x246   : > { %v908_v41 = vadd.f32 %v907_v40, %v674_v35  ;;  %v924_v42 = vmax.f32 %v906_v38, 0.0 }
 0x248   : > { %v925_v49 = vmax.f32 %v908_v41, 0.0  ;;  %v932_v14 = vpack.c.bf16 %v924_v42, %v922_v19 }
 0x24a   : > { %v933_v44 = vpack.c.bf16 %v925_v49, %v923_v43 }
 0x24c   : > { %1167 = vmatprep.mubr.bf16.mxu1 %v933_v44 }
 0x24d   : > { %1168 = vmatmul.mubr.bf16.gmra.mxu1 %v932_v14 }
 0x2f5   : > { %v1139_v21 = vpop.f32.mrf.mxu0 }
 0x2f6   : > { %v1140_v36 = vadd.f32 %v1139_v21, %v2330_v45 }
 0x2f7   : > { %v1141_v51 = vpop.f32.mrf.mxu0 }
 0x2f8   : > { %v1178_v35 = vmax.f32 %v1140_v36, 0.0  ;;  %v1142_v52 = vadd.f32 %v1141_v51, %v2333_v48 }
 0x2f9   : > { %v1143_v54 = vpop.f32.mrf.mxu0 }
 0x2fa   : > { %v1179_v0 = vmax.f32 %v1142_v52, 0.0  ;;  %v1144_v63 = vadd.f32 %v1143_v54, %v2330_v45  ;;  %v1194_v60 = vadd.f32 %v1178_v35, %v2237_v17 }
 0x2fb   : > { %v1145_v59 = vpop.f32.mrf.mxu0 }
 0x2fc   : > { %v1195_v47 = vadd.f32 %v1179_v0, %v2233_v15  ;;  %v1180_v23 = vmax.f32 %v1144_v63, 0.0  ;;  %v1146_v46 = vadd.f32 %v1145_v59, %v2333_v48 }
 0x2fd   : > { %v1149_v24 = vpop.f32.mrf.mxu0 }
 0x2fe   : > { %v1507_v61 = vpack.c.bf16 %v1195_v47, %v1194_v60  ;;  %v1181_v62 = vmax.f32 %v1146_v46, 0.0  ;;  %v1150_v2 = vadd.f32 %v1149_v24, %v2330_v45  ;;  %v1196_v55 = vadd.f32 %v1180_v23, %v2230_v10 }
 0x2ff   : > { %v1151_v56 = vpop.f32.mrf.mxu0 }
 0x300   : > { %1258 = vst [vmem:[%s2344_s18] sm:$0xff] %v1507_v61  ;;  %v1197_v17 = vadd.f32 %v1181_v62, %v2235_v16  ;;  %v1182_v15 = vmax.f32 %v1150_v2, 0.0  ;;  %v1152_v8 = vadd.f32 %v1151_v56, %v2333_v48 }
 0x301   : > { %v1153_v50 = vpop.f32.mrf.mxu0 }
 0x302   : > { %v1508_v9 = vpack.c.bf16 %v1197_v17, %v1196_v55  ;;  %v1183_v25 = vmax.f32 %v1152_v8, 0.0  ;;  %v1154_v18 = vadd.f32 %v1153_v50, %v2330_v45  ;;  %v1198_v3 = vadd.f32 %v1182_v15, %v2259_v7 }
 0x303   : > { %v1155_v4 = vpop.f32.mrf.mxu0 }
 0x304   : > { %1259 = vst [vmem:[%s2344_s18 + $0x8] sm:$0xff] %v1508_v9  ;;  %v1199_v27 = vadd.f32 %v1183_v25, %v2254_v5  ;;  %v1184_v28 = vmax.f32 %v1154_v18, 0.0  ;;  %v1156_v10 = vadd.f32 %v1155_v4, %v2333_v48 }
 0x305   : > { %v1159_v16 = vpop.f32.mrf.mxu1 }
 0x306   : > { %v1509_v29 = vpack.c.bf16 %v1199_v27, %v1198_v3  ;;  %v1185_v30 = vmax.f32 %v1156_v10, 0.0  ;;  %v1160_v31 = vadd.f32 %v1159_v16, %v2330_v45  ;;  %v1200_v33 = vadd.f32 %v1184_v28, %v2251_v1 }
 0x307   : > { %v1161_v32 = vpop.f32.mrf.mxu1 }
 0x308   : > { %1260 = vst [vmem:[%s2344_s18 + $0x10] sm:$0xff] %v1509_v29  ;;  %v1201_v34 = vadd.f32 %v1185_v30, %v2256_v6  ;;  %v1186_v37 = vmax.f32 %v1160_v31, 0.0  ;;  %v1162_v7 = vadd.f32 %v1161_v32, %v2333_v48 }
 0x309   : > { %v1163_v5 = vpop.f32.mrf.mxu1 }
 0x30a   : > { %v1510_v38 = vpack.c.bf16 %v1201_v34, %v1200_v33  ;;  %v1187_v39 = vmax.f32 %v1162_v7, 0.0  ;;  %v1164_v40 = vadd.f32 %v1163_v5, %v2330_v45  ;;  %v1202_v42 = vadd.f32 %v1186_v37, %v2283_v58 }
 0x30b   : > { %v1165_v41 = vpop.f32.mrf.mxu1 }
 0x30c   : > { %1261 = vst [vmem:[%s2344_s18 + $0x18] sm:$0xff] %v1510_v38  ;;  %v1203_v43 = vadd.f32 %v1187_v39, %v2278_v22  ;;  %v1188_v49 = vmax.f32 %v1164_v40, 0.0  ;;  %v1166_v1 = vadd.f32 %v1165_v41, %v2333_v48 }
 0x30d   : > { %v1169_v6 = vpop.f32.mrf.mxu1 }
 0x30e   : > { %v1511_v19 = vpack.c.bf16 %v1203_v43, %v1202_v42  ;;  %v1189_v44 = vmax.f32 %v1166_v1, 0.0  ;;  %v1170_v14 = vadd.f32 %v1169_v6, %v2330_v45  ;;  %v1204_v21 = vadd.f32 %v1188_v49, %v2275_v53 }
 0x30f   : > { %v1171_v13 = vpop.f32.mrf.mxu1 }
 0x310   : > { %1262 = vst [vmem:[%s2344_s18 + $0x20] sm:$0xff] %v1511_v19  ;;  %v1205_v36 = vadd.f32 %v1189_v44, %v2280_v57  ;;  %v1190_v58 = vmax.f32 %v1170_v14, 0.0  ;;  %v1172_v22 = vadd.f32 %v1171_v13, %v2333_v48 }
 0x311   : > { %v1173_v51 = vpop.f32.mrf.mxu1 }
 0x312   : > { %v1512_v35 = vpack.c.bf16 %v1205_v36, %v1204_v21  ;;  %v1191_v52 = vmax.f32 %v1172_v22, 0.0  ;;  %v1174_v54 = vadd.f32 %v1173_v51, %v2330_v45  ;;  %v1206_v63 = vadd.f32 %v1190_v58, %v2306_v12 }
 0x313   : > { %v1175_v0 = vpop.f32.mrf.mxu1 }
 0x314   : > { %1263 = vst [vmem:[%s2344_s18 + $0x28] sm:$0xff] %v1512_v35  ;;  %v1207_v53 = vadd.f32 %v1191_v52, %v2302_v11  ;;  %v1192_v59 = vmax.f32 %v1174_v54, 0.0  ;;  %v1176_v57 = vadd.f32 %v1175_v0, %v2333_v48 }
 0x316   : > { %v1513_v60 = vpack.c.bf16 %v1207_v53, %v1206_v63  ;;  %v1193_v47 = vmax.f32 %v1176_v57, 0.0  ;;  %v1208_v23 = vadd.f32 %v1192_v59, %v2299_v20 }
 0x318   : > { %1264 = vst [vmem:[%s2344_s18 + $0x30] sm:$0xff] %v1513_v60  ;;  %v1209_v45 = vadd.f32 %v1193_v47, %v2304_v26 }
 0x31a   : > { %v1514_v11 = vpack.c.bf16 %v1209_v45, %v1208_v23 }
 0x31c   : > { %1265 = vst [vmem:[%s2344_s18 + $0x38] sm:$0xff] %v1514_v11 }
 0x31d   : > { %1867 = shalt.err (!%p1864_p9)
}
 0x31e   : > { %s1868_s22 = scalar_lea.hbm %s2383_s29, 1024  ;;  %s1872_s26 = scalar_lea.hbm %s2432_s3, 2048 }
 0x31f   : > { %p1869_p13 = scmp.ne.s32.totalorder %s2383_s29, %s1868_s22  ;;  %p1873_p4 = scmp.lt.s32.totalorder %s2383_s29, %s2432_s3 }
 0x320   : > { %p1874_p8 = scmp.lt.s32.totalorder %s1872_s26, %s1868_s22 }
 0x321   : > { %p1870_p5 = pnand %p1869_p13, %p2448_p10 }
 0x322   : > { %p1875_p3 = por %p1874_p8, %p1873_p4 }
 0x323   : > { %p1871_p0 = pneg %p1870_p5 }
 0x325   : > { %p1876_p11 = pnand %p1875_p3, %p1871_p0 }
 0x327   : > { %1879 = shalt.err (!%p1876_p11)
}
 0x328   : > { %s1932_s6 = smov 128   ;;  %s1933_s18 = smov 8  }
 0x329   : > { %1559 = dma.vmem_to_hbm [thread:$0]  (%p2448_p10), %s2385_s25, 1024, %s2383_s29, %s1267_s8, %s1932_s6, %s1932_s6, %s1933_s18  }
 0x32a PF: > { %s1296_s20 = sand.u32 1, %s1910_s12   ;;  %p2449_p1 = scmp.ne.s32.totalorder %s2438_s19, 0 }
 0x32b   : > { %p2450_p2 = scmp.ge.s32.totalorder %s1922_s15, 2  ;;  %s1297_s27 = scalar_lea.sflag [#allocation4], %s1296_s20 }
 0x32d   : > { %p1573_p6 = pnand %p2450_p2, %p2449_p1 }
 0x32f   : > { %p1574_p12 = pneg %p1573_p6 }
 0x331   : > { %1905 = dma.done.wait (%p1574_p12), %s1297_s27, 1024  }
 0x332   : > { %1907 = vsyncadd (%p1574_p12), %s1297_s27, 4294966272  ;;  %p17_p7 = scmp.ge.s32.totalorder %s2026_s7, 4   ;;  %s2451_s12 = smov %s1914_s13 }
 0x333   : > { %s2452_s13 = smov %s1918_s14  ;;  %s2453_s14 = smov %s2042_s11 }
 0x334   : > { %s2454_s15 = smov %s2026_s7  ;;  %19 = sbr.rel (!%p17_p7) target bundleno = 6 (0x6), region = 85 }
 0x339   :  { %1302 = vsyncpa [#allocation3], 1 }
 0x33a   :  { %1304 = vsyncpa [#allocation3 + $0x1], 1 }
 0x33b   :  { %1305 = vsyncpa [#allocation6], 1 }
 0x33c   :  { %1306 = vsyncpa [#allocation4], 1 }
 0x33d   :  { %1308 = vsyncpa [#allocation4 + $0x1], 1 }

</bundles_post_ra>
